<compile_context>
chip_gen: v7x
topology: tpu7x:2x2x1
jax: 0.10.0
libtpu: 0.0.40
codegen_flags: <defaults>
</compile_context>

<pallas_src>
import jax
import jax.numpy as jnp
from jax.experimental import pallas as pl
from jax.experimental.pallas import tpu as pltpu


def _ae_dma_copy_kernel(x_hbm, h_hbm, sem):
    # Single whole-array HBM -> HBM DMA (Encoder h = x). No grid, no VMEM
    # staging: the DMA engine streams the copy at HBM bandwidth.
    copy = pltpu.make_async_copy(x_hbm, h_hbm, sem)
    copy.start()
    copy.wait()


def _ae_dma_copy(x):
    nbytes = x.size * x.dtype.itemsize
    return pl.pallas_call(
        _ae_dma_copy_kernel,
        out_shape=jax.ShapeDtypeStruct(x.shape, x.dtype),
        in_specs=[pl.BlockSpec(memory_space=pl.ANY)],
        out_specs=pl.BlockSpec(memory_space=pl.ANY),
        scratch_shapes=[pltpu.SemaphoreType.DMA(())],
        compiler_params=pltpu.CompilerParams(has_side_effects=True),
        cost_estimate=pl.CostEstimate(
            flops=0,
            transcendentals=0,
            bytes_accessed=2 * nbytes,  # 1 read + 1 write
        ),
    )(x)


def ae_forward(x):
    """AE.forward(x) -> (r, h) with exact PyTorch aliasing semantics.

    Encoder and Decoder are identities, so h IS x and r IS h (same array).
    No kernel launch, no HBM traffic — this is the fastest correct
    implementation on every TPU generation.
    """
    h = x
    r = h
    return r, h


def ae_forward_materialized(x):
    """AE.forward(x) -> (r, h) where h is a physically distinct buffer.

    Uses a single Pallas whole-array HBM->HBM DMA (no grid / VMEM staging).
    r aliases h, matching the PyTorch module where the Decoder is identity.
    """
    h = _ae_dma_copy(x)
    r = h
    return r, h


if __name__ == "__main__":
    # No parameters to initialize: Encoder/Decoder have no learnable weights.
    key = jax.random.PRNGKey(0)
    x = jax.random.normal(key, (2, 4, 16, 16), dtype=jnp.float32)

    # Fast (aliasing) path — exact module semantics, zero HBM traffic.
    r, h = ae_forward(x)
    jax.block_until_ready((r, h))
    assert r.shape == x.shape and h.shape == x.shape
    assert r.dtype == x.dtype and h.dtype == x.dtype
    assert bool(jnp.all(r == x)) and bool(jnp.all(h == x))

    # Materialized path — exercises the Pallas HBM->HBM DMA kernel once.
    rm, hm = ae_forward_materialized(x)
    jax.block_until_ready((rm, hm))
    assert rm.shape == x.shape and hm.shape == x.shape
    assert rm.dtype == x.dtype and hm.dtype == x.dtype
    assert bool(jnp.all(rm == x)) and bool(jnp.all(hm == x))

    # Arbitrary (non-128-multiple) shape works with no pad/slice path at all.
    x2 = jax.random.normal(jax.random.PRNGKey(1), (2, 3, 5, 7), dtype=jnp.float32)
    r2, h2 = ae_forward_materialized(x2)
    jax.block_until_ready((r2, h2))
    assert r2.shape == x2.shape and h2.shape == x2.shape
    assert bool(jnp.all(r2 == x2)) and bool(jnp.all(h2 == x2))

    print("KERNEL_OK")
</pallas_src>

<mosaic_0001>
module attributes {stable_mosaic.version = 11 : i64} {
  func.func @_ae_dma_copy_kernel(%arg0: memref<2x4x16x16xf32, #tpu.memory_space<any>>, %arg1: memref<2x4x16x16xf32, #tpu.memory_space<any>>, %arg2: memref<!tpu.dma_semaphore, #tpu.memory_space<semaphore_mem>>) attributes {dimension_semantics = [], scalar_prefetch = 0 : i64, scratch_operands = 1 : i64, tpu.core_type = #tpu.core_type<tc>} {
    tpu.enqueue_dma source(%arg0 : memref<2x4x16x16xf32, #tpu.memory_space<any>>) target(%arg1 : memref<2x4x16x16xf32, #tpu.memory_space<any>>) target_semaphore(%arg2 : memref<!tpu.dma_semaphore, #tpu.memory_space<semaphore_mem>>)
    tpu.wait_dma2 semaphore(%arg2 : memref<!tpu.dma_semaphore, #tpu.memory_space<semaphore_mem>>) src(%arg0 : memref<2x4x16x16xf32, #tpu.memory_space<any>>) dst(%arg1 : memref<2x4x16x16xf32, #tpu.memory_space<any>>)
    return
  }
}

</mosaic_0001>

<bundles_post_ra>
// kernel: tpu_custom_call.1
= control target key start
LH: loop header
LB: loop body
LE: loop exit
PB: predicated region body
PF: predicated region fallthrough
CT: control target
= control target key end

     0   :  { %s36_s6 = smov [#allocation2]   ;;  %s37_s7 = smov [#allocation3]   ;;  %s55_s0 = inlined_call_operand.hbm [shape: f32[2,4,16,16], index: 0, kind: input, shape index: {}]   ;;  %s56_s1 = inlined_call_operand.hbm [shape: f32[2,4,16,16], index: 1, kind: output, shape index: {}]  }
   0x1   :  { %s38_s8 = smov 0  }
   0x2   :  { %18 = dma.general %s55_s0, 2048, %s56_s1, %s36_s6, %s37_s7, [#allocation4], %s38_s8, 0  }
   0x3   :  { %34 = dma.done.wait [#allocation2], 2048 }
   0x4   :  { %35 = vsyncadd [#allocation2], 4294965248 }
   0x5   :  { %24 = vsyncmov [#allocation2] }
   0x8   :  { %s25_s13 = vpop.sfrf %24 }
   0x9   :  { %p30_p0 = scmp.ne.s32.totalorder %s25_s13, 0 }
   0xb   :  { %29 = shalt.err (%p30_p0)  }

</bundles_post_ra>
